<compile_context>
chip_gen: v5e
topology: v5e:2x2
jax: 0.10.0
libtpu: 0.0.40
codegen_flags: <defaults>
</compile_context>

<pallas_src>
import math

import jax
import jax.numpy as jnp
from jax.experimental import pallas as pl
from jax.experimental.pallas import tpu as pltpu

# ----------------------------- configuration --------------------------------
B = 2               # batch
S = 16              # sequence length
D = 32              # bert_feature_dim == hidden_size
I = 64              # intermediate_size
NS = 10             # number of candidate spans per sentence
MAX_SPAN_LEN = 3    # max_span_length
NUM_CLASSES = 4     # len(validity2id) - 2
EPS = 1e-12         # layer_norm_eps

W_STATIC = MAX_SPAN_LEN + 1       # static span window width (cols beyond batch max are masked)
N_ROWS = B * NS                   # rows processed by the fused kernel
BS = B * S                        # flattened token count (selection-matrix contraction dim)
OUT_W = 128                       # lane-dense output slab width
_PAD = OUT_W - (3 * D + 2 * NUM_CLASSES)   # 128 - 104 = 24 zero-pad columns
_BIAS_ROWS = 5                    # b1 | b2_cat | gamma_cat | beta_cat | head_b_cat


# ------------------------------ Pallas kernel --------------------------------
def _full_spec(shape):
    nd = len(shape)
    return pl.BlockSpec(shape, lambda i, _nd=nd: (0,) * _nd)


def _step1_fused_kernel(denom_ref, sel_ref, feat_ref, w1_ref, w2_ref, head_ref,
                        bias_ref, out_ref):
    # ---- unpack the bias/gamma/beta slab (one [5, 128] DMA) -------------------
    bias = bias_ref[...]                                 # [5, 128]
    b1 = bias[0:1, :]                                    # [1, 2I]   fwd|rev
    b2c = bias[1:2, :2 * D]                              # [1, 2D]   fwd|rev
    gamma_c = bias[2:3, :2 * D]                          # [1, 2D]   fwd|rev
    beta_c = bias[3:4, :2 * D]                           # [1, 2D]   fwd|rev
    head_b = bias[4:5, :2 * NUM_CLASSES]                 # [1, 2C]   asp|opi

    # ---- masked span mean-pooling as a selection-matrix matmul ----------------
    # pooled[n] = sum of bert features over span n's (masked) window
    pooled = jnp.dot(sel_ref[...], feat_ref[...],
                     preferred_element_type=jnp.float32)            # [N, D]
    # torch: .mean(dim=2) divides by max_batch_span_width (dynamic SMEM scalar)
    x = pooled / denom_ref[0, 0]                                    # exact divide

    # ---- Step_1_module Intermediate: fwd|rev packed into one [D, 2I] matmul ---
    h = jnp.dot(x, w1_ref[...], preferred_element_type=jnp.float32) + b1   # [N, 2I]
    c = 0.7978845608028654  # sqrt(2/pi)  (hidden_act='gelu_new', tanh approximation)
    h = 0.5 * h * (1.0 + jnp.tanh(c * (h + 0.044715 * h * h * h)))

    # ---- Step_1_module Output: block-diagonal Linear + residual + LayerNorm ---
    x_cat = jnp.concatenate([x, x], axis=-1)                        # [N, 2D]
    y = jnp.dot(h, w2_ref[...], preferred_element_type=jnp.float32) + b2c + x_cat

    def _ln_half(z):
        mu = jnp.mean(z, axis=-1, keepdims=True)
        var = jnp.mean(jnp.square(z - mu), axis=-1, keepdims=True)
        return (z - mu) * jax.lax.rsqrt(var + EPS)

    se_cat = jnp.concatenate([_ln_half(y[:, :D]), _ln_half(y[:, D:])],
                             axis=-1) * gamma_c + beta_c            # [N, 2D] = se1|se2

    # ---- sentiment classifier heads (one block-diagonal matmul) ---------------
    logits = jnp.dot(se_cat, head_ref[...],
                     preferred_element_type=jnp.float32) + head_b   # [N, 2C] = la|lo

    # ---- single unmasked 128-lane-wide store of the output slab ---------------
    n = x.shape[0]
    out_ref[...] = jnp.concatenate(
        [x, se_cat, logits, jnp.zeros((n, _PAD), jnp.float32)], axis=-1)


def _step1_pallas(sel, feat, denom, params):
    args = (denom, sel, feat,
            params["w1_cat"], params["w2_blk"], params["head_blk"], params["bias_slab"])
    in_specs = [pl.BlockSpec(memory_space=pltpu.MemorySpace.SMEM)] \
        + [_full_spec(a.shape) for a in args[1:]]
    return pl.pallas_call(
        _step1_fused_kernel,
        out_shape=jax.ShapeDtypeStruct((N_ROWS, OUT_W), jnp.float32),
        grid=(1,),
        in_specs=in_specs,
        out_specs=_full_spec((N_ROWS, OUT_W)),
        compiler_params=pltpu.CompilerParams(dimension_semantics=("arbitrary",)),
    )(*args)


# ------------------------------ parameters -----------------------------------
def _linear_init(key, fan_in, fan_out):
    bound = 1.0 / math.sqrt(fan_in)
    kw, kb = jax.random.split(key)
    w = jax.random.uniform(kw, (fan_in, fan_out), jnp.float32, -bound, bound)
    b = jax.random.uniform(kb, (1, fan_out), jnp.float32, -bound, bound)
    return w, b


def init_params(key):
    ks = jax.random.split(key, 6)
    # forward_1_decoders[0] / reverse_1_decoders[0]  (block_num=2 -> one module each)
    fwd_w1, fwd_b1 = _linear_init(ks[0], D, I)
    fwd_w2, fwd_b2 = _linear_init(ks[1], I, D)
    rev_w1, rev_b1 = _linear_init(ks[2], D, I)
    rev_w2, rev_b2 = _linear_init(ks[3], I, D)
    fwd_gamma = jnp.ones((1, D), jnp.float32)
    fwd_beta = jnp.zeros((1, D), jnp.float32)
    rev_gamma = jnp.ones((1, D), jnp.float32)
    rev_beta = jnp.zeros((1, D), jnp.float32)
    # classifier heads
    asp_w, asp_b = _linear_init(ks[4], D, NUM_CLASSES)
    opi_w, opi_b = _linear_init(ks[5], D, NUM_CLASSES)

    p = {}
    # first-layer weights of both branches concatenated along lanes: [D, 2I] = [32, 128]
    p["w1_cat"] = jnp.concatenate([fwd_w1, rev_w1], axis=1)
    # second-layer (Output.dense) weights block-diagonal: [2I, 2D] = [128, 64]
    w2_blk = jnp.zeros((2 * I, 2 * D), jnp.float32)
    w2_blk = w2_blk.at[:I, :D].set(fwd_w2).at[I:, D:].set(rev_w2)
    p["w2_blk"] = w2_blk
    # classifier heads block-diagonal: [2D, 2C] = [64, 8]
    head_blk = jnp.zeros((2 * D, 2 * NUM_CLASSES), jnp.float32)
    head_blk = head_blk.at[:D, :NUM_CLASSES].set(asp_w).at[D:, NUM_CLASSES:].set(opi_w)
    p["head_blk"] = head_blk
    # all biases / LayerNorm params packed into a single [5, 128] slab
    slab = jnp.zeros((_BIAS_ROWS, OUT_W), jnp.float32)
    slab = slab.at[0, :2 * I].set(jnp.concatenate([fwd_b1, rev_b1], axis=1)[0])
    slab = slab.at[1, :2 * D].set(jnp.concatenate([fwd_b2, rev_b2], axis=1)[0])
    slab = slab.at[2, :2 * D].set(jnp.concatenate([fwd_gamma, rev_gamma], axis=1)[0])
    slab = slab.at[3, :2 * D].set(jnp.concatenate([fwd_beta, rev_beta], axis=1)[0])
    slab = slab.at[4, :2 * NUM_CLASSES].set(jnp.concatenate([asp_b, opi_b], axis=1)[0])
    p["bias_slab"] = slab
    return p


# ------------------------------- forward pass ---------------------------------
@jax.jit
def _step_1_core(params, input_bert_features, spans):
    bert_feature = input_bert_features.astype(jnp.float32)          # [B, S, D]

    starts = spans[:, :, 0]                                          # [B, NS]
    ends = spans[:, :, 1]                                            # [B, NS]
    widths = ends - starts

    # torch: max_batch_span_width = widths.max() + 1 is the window AND the mean
    # denominator.  Window is static (W_STATIC >= it, extra cols masked); the
    # denominator stays dynamic to match torch .mean(dim=2) exactly (no host sync).
    denom = (jnp.max(widths) + 1).astype(jnp.float32).reshape(1, 1)

    # Build the [N_ROWS, B*S] span-selection matrix (block-diagonal over batch,
    # ones at valid window positions).  Replaces the dynamic gather entirely.
    rng = jnp.arange(W_STATIC, dtype=jnp.int32)                      # [W]
    pos = starts[:, :, None] + rng[None, None, :]                    # [B, NS, W]
    valid = (rng[None, None, :] <= widths[:, :, None]) & (pos >= 0) & (pos < S)
    onehot = (pos[:, :, :, None] == jnp.arange(S, dtype=jnp.int32)[None, None, None, :]) \
        & valid[:, :, :, None]                                       # [B, NS, W, S]
    sel_in_batch = jnp.sum(onehot.astype(jnp.float32), axis=2)       # [B, NS, S]
    eye = jnp.eye(B, dtype=jnp.float32)
    sel = jnp.einsum('bns,bc->bncs', sel_in_batch, eye).reshape(N_ROWS, BS)

    feat = bert_feature.reshape(BS, D)                               # [B*S, D]

    slab = _step1_pallas(sel, feat, denom, params)                   # [N, 128]

    spans_embedding = slab[:, 0:D].reshape(B, NS, D)
    se1 = slab[:, D:2 * D].reshape(B, NS, D)
    se2 = slab[:, 2 * D:3 * D].reshape(B, NS, D)
    class_logits_aspect = slab[:, 3 * D:3 * D + NUM_CLASSES].reshape(B, NS, NUM_CLASSES)
    class_logits_opinion = slab[:, 3 * D + NUM_CLASSES:3 * D + 2 * NUM_CLASSES].reshape(
        B, NS, NUM_CLASSES)
    return class_logits_aspect, class_logits_opinion, spans_embedding, se1, se2


def step_1_forward(params, input_bert_features, attention_mask, spans, span_mask,
                   related_spans_tensor, sentence_length):
    # attention_mask / span_mask / related_spans_tensor / sentence_length are unused
    # in this configuration (span_generation='Average', related_span_underline=False).
    del attention_mask, span_mask, related_spans_tensor, sentence_length
    # TODO(synk): related_span_underline branch (Pointer_Block cross-attention) not
    # instantiated in this configuration (related_span_underline=False).
    la, lo, spans_embedding, se1, se2 = _step_1_core(params, input_bert_features, spans)
    features_mask_tensor = None
    return la, lo, spans_embedding, se1, se2, features_mask_tensor


# ---------------------------------- main --------------------------------------
if __name__ == "__main__":
    key = jax.random.PRNGKey(0)
    k_feat, k_start, k_width, k_param = jax.random.split(key, 4)

    input_bert_features = jax.random.normal(k_feat, (B, S, D), dtype=jnp.float32)
    attention_mask = jnp.ones((B, S), dtype=jnp.int32)

    starts = jax.random.randint(k_start, (B, NS), 0, S - MAX_SPAN_LEN, dtype=jnp.int32)
    widths = jax.random.randint(k_width, (B, NS), 0, MAX_SPAN_LEN, dtype=jnp.int32)
    ends = starts + widths
    spans = jnp.stack([starts, ends, widths], axis=-1)               # [B, NS, 3]
    span_mask = jnp.ones((B, NS), dtype=jnp.int32)
    related_spans_tensor = jnp.ones((B, NS, NS), dtype=jnp.bool_)
    sentence_length = [(None, S, NS)] * B

    params = init_params(k_param)

    outs = step_1_forward(params, input_bert_features, attention_mask, spans,
                          span_mask, related_spans_tensor, sentence_length)
    for o in outs:
        if o is not None:
            jax.block_until_ready(o)
    print("KERNEL_OK")
</pallas_src>

<mosaic_0001>
module attributes {stable_mosaic.version = 11 : i64} {
  func.func @_step1_fused_kernel(%arg0: i32, %arg1: memref<1x1xf32, #tpu.memory_space<smem>>, %arg2: memref<20x32xf32, #tpu.memory_space<vmem>>, %arg3: memref<32x32xf32, #tpu.memory_space<vmem>>, %arg4: memref<32x128xf32, #tpu.memory_space<vmem>>, %arg5: memref<128x64xf32, #tpu.memory_space<vmem>>, %arg6: memref<64x8xf32, #tpu.memory_space<vmem>>, %arg7: memref<5x128xf32, #tpu.memory_space<vmem>>, %arg8: memref<20x128xf32, #tpu.memory_space<vmem>>) attributes {dimension_semantics = [#tpu.dimension_semantics<arbitrary>], iteration_bounds = array<i64: 1>, scalar_prefetch = 0 : i64, scratch_operands = 0 : i64, tpu.core_type = #tpu.core_type<tc>, window_params = [{transform_indices = @transform_0, window_bounds = array<i64: 1, 1>}, {pipeline_mode = #tpu.pipeline_mode<synchronous>, transform_indices = @transform_1, window_bounds = array<i64: 20, 32>}, {pipeline_mode = #tpu.pipeline_mode<synchronous>, transform_indices = @transform_2, window_bounds = array<i64: 32, 32>}, {pipeline_mode = #tpu.pipeline_mode<synchronous>, transform_indices = @transform_3, window_bounds = array<i64: 32, 128>}, {pipeline_mode = #tpu.pipeline_mode<synchronous>, transform_indices = @transform_4, window_bounds = array<i64: 128, 64>}, {pipeline_mode = #tpu.pipeline_mode<synchronous>, transform_indices = @transform_5, window_bounds = array<i64: 64, 8>}, {pipeline_mode = #tpu.pipeline_mode<synchronous>, transform_indices = @transform_6, window_bounds = array<i64: 5, 128>}, {pipeline_mode = #tpu.pipeline_mode<synchronous>, transform_indices = @transform_7, window_bounds = array<i64: 20, 128>}]} {
    %c0 = arith.constant 0 : index
    %c0_0 = arith.constant 0 : index
    %0 = vector.load %arg7[%c0, %c0_0] : memref<5x128xf32, #tpu.memory_space<vmem>>, vector<5x128xf32>
    %1 = vector.extract_strided_slice %0 {offsets = [0, 0], sizes = [1, 128], strides = [1, 1]} : vector<5x128xf32> to vector<1x128xf32>
    %2 = vector.extract_strided_slice %0 {offsets = [1, 0], sizes = [1, 64], strides = [1, 1]} : vector<5x128xf32> to vector<1x64xf32>
    %3 = vector.extract_strided_slice %0 {offsets = [2, 0], sizes = [1, 64], strides = [1, 1]} : vector<5x128xf32> to vector<1x64xf32>
    %4 = vector.extract_strided_slice %0 {offsets = [3, 0], sizes = [1, 64], strides = [1, 1]} : vector<5x128xf32> to vector<1x64xf32>
    %5 = vector.extract_strided_slice %0 {offsets = [4, 0], sizes = [1, 8], strides = [1, 1]} : vector<5x128xf32> to vector<1x8xf32>
    %c0_1 = arith.constant 0 : index
    %c0_2 = arith.constant 0 : index
    %6 = vector.load %arg2[%c0_1, %c0_2] : memref<20x32xf32, #tpu.memory_space<vmem>>, vector<20x32xf32>
    %c0_3 = arith.constant 0 : index
    %c0_4 = arith.constant 0 : index
    %7 = vector.load %arg3[%c0_3, %c0_4] : memref<32x32xf32, #tpu.memory_space<vmem>>, vector<32x32xf32>
    %cst = arith.constant dense<0.000000e+00> : vector<20x32xf32>
    %8 = tpu.matmul %6, %7, %cst {dimension_numbers = #tpu.dot_dimension_numbers<[1], [0], [0], [1], [0, 0, 1, 1], [], []>} : vector<20x32xf32>, vector<32x32xf32>, vector<20x32xf32> -> vector<20x32xf32>
    %c0_5 = arith.constant 0 : index
    %c0_6 = arith.constant 0 : index
    %9 = memref.load %arg1[%c0_5, %c0_6] : memref<1x1xf32, #tpu.memory_space<smem>>
    %10 = vector.broadcast %9 : f32 to vector<20x32xf32>
    %11 = arith.divf %8, %10 : vector<20x32xf32>
    %c0_7 = arith.constant 0 : index
    %c0_8 = arith.constant 0 : index
    %12 = vector.load %arg4[%c0_7, %c0_8] : memref<32x128xf32, #tpu.memory_space<vmem>>, vector<32x128xf32>
    %cst_9 = arith.constant dense<0.000000e+00> : vector<20x128xf32>
    %13 = tpu.matmul %11, %12, %cst_9 {dimension_numbers = #tpu.dot_dimension_numbers<[1], [0], [0], [1], [0, 0, 1, 1], [], []>} : vector<20x32xf32>, vector<32x128xf32>, vector<20x128xf32> -> vector<20x128xf32>
    %14 = vector.broadcast %1 : vector<1x128xf32> to vector<20x128xf32>
    %15 = arith.addf %13, %14 : vector<20x128xf32>
    %cst_10 = arith.constant 5.000000e-01 : f32
    %16 = vector.broadcast %cst_10 : f32 to vector<20x128xf32>
    %17 = arith.mulf %16, %15 : vector<20x128xf32>
    %cst_11 = arith.constant 4.471500e-02 : f32
    %18 = vector.broadcast %cst_11 : f32 to vector<20x128xf32>
    %19 = arith.mulf %18, %15 : vector<20x128xf32>
    %20 = arith.mulf %19, %15 : vector<20x128xf32>
    %21 = arith.mulf %20, %15 : vector<20x128xf32>
    %22 = arith.addf %15, %21 : vector<20x128xf32>
    %cst_12 = arith.constant 0.797884583 : f32
    %23 = vector.broadcast %cst_12 : f32 to vector<20x128xf32>
    %24 = arith.mulf %23, %22 : vector<20x128xf32>
    %25 = math.tanh %24 : vector<20x128xf32>
    %cst_13 = arith.constant 1.000000e+00 : f32
    %26 = vector.broadcast %cst_13 : f32 to vector<20x128xf32>
    %27 = arith.addf %26, %25 : vector<20x128xf32>
    %28 = arith.mulf %17, %27 : vector<20x128xf32>
    %29 = tpu.concatenate %11, %11 in 1 : vector<20x32xf32>, vector<20x32xf32> -> vector<20x64xf32>
    %c0_14 = arith.constant 0 : index
    %c0_15 = arith.constant 0 : index
    %30 = vector.load %arg5[%c0_14, %c0_15] : memref<128x64xf32, #tpu.memory_space<vmem>>, vector<128x64xf32>
    %cst_16 = arith.constant dense<0.000000e+00> : vector<20x64xf32>
    %31 = tpu.matmul %28, %30, %cst_16 {dimension_numbers = #tpu.dot_dimension_numbers<[1], [0], [0], [1], [0, 0, 1, 1], [], []>} : vector<20x128xf32>, vector<128x64xf32>, vector<20x64xf32> -> vector<20x64xf32>
    %32 = vector.broadcast %2 : vector<1x64xf32> to vector<20x64xf32>
    %33 = arith.addf %31, %32 : vector<20x64xf32>
    %34 = arith.addf %33, %29 : vector<20x64xf32>
    %35 = vector.extract_strided_slice %34 {offsets = [0, 0], sizes = [20, 32], strides = [1, 1]} : vector<20x64xf32> to vector<20x32xf32>
    %cst_17 = arith.constant dense<0.000000e+00> : vector<20xf32>
    %36 = vector.multi_reduction <add>, %35, %cst_17 [1] : vector<20x32xf32> to vector<20xf32>
    %37 = vector.shape_cast %36 : vector<20xf32> to vector<20x1xf32>
    %cst_18 = arith.constant 3.200000e+01 : f32
    %38 = vector.broadcast %cst_18 : f32 to vector<20x1xf32>
    %39 = arith.divf %37, %38 : vector<20x1xf32>
    %40 = vector.broadcast %39 : vector<20x1xf32> to vector<20x32xf32>
    %41 = arith.subf %35, %40 : vector<20x32xf32>
    %42 = arith.mulf %41, %41 : vector<20x32xf32>
    %cst_19 = arith.constant dense<0.000000e+00> : vector<20xf32>
    %43 = vector.multi_reduction <add>, %42, %cst_19 [1] : vector<20x32xf32> to vector<20xf32>
    %44 = vector.shape_cast %43 : vector<20xf32> to vector<20x1xf32>
    %cst_20 = arith.constant 3.200000e+01 : f32
    %45 = vector.broadcast %cst_20 : f32 to vector<20x1xf32>
    %46 = arith.divf %44, %45 : vector<20x1xf32>
    %47 = vector.broadcast %39 : vector<20x1xf32> to vector<20x32xf32>
    %48 = arith.subf %35, %47 : vector<20x32xf32>
    %cst_21 = arith.constant 9.99999996E-13 : f32
    %49 = vector.broadcast %cst_21 : f32 to vector<20x1xf32>
    %50 = arith.addf %46, %49 : vector<20x1xf32>
    %51 = math.rsqrt %50 : vector<20x1xf32>
    %52 = vector.broadcast %51 : vector<20x1xf32> to vector<20x32xf32>
    %53 = arith.mulf %48, %52 : vector<20x32xf32>
    %54 = vector.extract_strided_slice %34 {offsets = [0, 32], sizes = [20, 32], strides = [1, 1]} : vector<20x64xf32> to vector<20x32xf32>
    %cst_22 = arith.constant dense<0.000000e+00> : vector<20xf32>
    %55 = vector.multi_reduction <add>, %54, %cst_22 [1] : vector<20x32xf32> to vector<20xf32>
    %56 = vector.shape_cast %55 : vector<20xf32> to vector<20x1xf32>
    %cst_23 = arith.constant 3.200000e+01 : f32
    %57 = vector.broadcast %cst_23 : f32 to vector<20x1xf32>
    %58 = arith.divf %56, %57 : vector<20x1xf32>
    %59 = vector.broadcast %58 : vector<20x1xf32> to vector<20x32xf32>
    %60 = arith.subf %54, %59 : vector<20x32xf32>
    %61 = arith.mulf %60, %60 : vector<20x32xf32>
    %cst_24 = arith.constant dense<0.000000e+00> : vector<20xf32>
    %62 = vector.multi_reduction <add>, %61, %cst_24 [1] : vector<20x32xf32> to vector<20xf32>
    %63 = vector.shape_cast %62 : vector<20xf32> to vector<20x1xf32>
    %cst_25 = arith.constant 3.200000e+01 : f32
    %64 = vector.broadcast %cst_25 : f32 to vector<20x1xf32>
    %65 = arith.divf %63, %64 : vector<20x1xf32>
    %66 = vector.broadcast %58 : vector<20x1xf32> to vector<20x32xf32>
    %67 = arith.subf %54, %66 : vector<20x32xf32>
    %cst_26 = arith.constant 9.99999996E-13 : f32
    %68 = vector.broadcast %cst_26 : f32 to vector<20x1xf32>
    %69 = arith.addf %65, %68 : vector<20x1xf32>
    %70 = math.rsqrt %69 : vector<20x1xf32>
    %71 = vector.broadcast %70 : vector<20x1xf32> to vector<20x32xf32>
    %72 = arith.mulf %67, %71 : vector<20x32xf32>
    %73 = tpu.concatenate %53, %72 in 1 : vector<20x32xf32>, vector<20x32xf32> -> vector<20x64xf32>
    %74 = vector.broadcast %3 : vector<1x64xf32> to vector<20x64xf32>
    %75 = arith.mulf %73, %74 : vector<20x64xf32>
    %76 = vector.broadcast %4 : vector<1x64xf32> to vector<20x64xf32>
    %77 = arith.addf %75, %76 : vector<20x64xf32>
    %c0_27 = arith.constant 0 : index
    %c0_28 = arith.constant 0 : index
    %78 = vector.load %arg6[%c0_27, %c0_28] : memref<64x8xf32, #tpu.memory_space<vmem>>, vector<64x8xf32>
    %cst_29 = arith.constant dense<0.000000e+00> : vector<20x8xf32>
    %79 = tpu.matmul %77, %78, %cst_29 {dimension_numbers = #tpu.dot_dimension_numbers<[1], [0], [0], [1], [0, 0, 1, 1], [], []>} : vector<20x64xf32>, vector<64x8xf32>, vector<20x8xf32> -> vector<20x8xf32>
    %80 = vector.broadcast %5 : vector<1x8xf32> to vector<20x8xf32>
    %81 = arith.addf %79, %80 : vector<20x8xf32>
    %cst_30 = arith.constant 0.000000e+00 : f32
    %82 = vector.broadcast %cst_30 : f32 to vector<20x24xf32>
    %83 = tpu.concatenate %11, %77, %81, %82 in 1 : vector<20x32xf32>, vector<20x64xf32>, vector<20x8xf32>, vector<20x24xf32> -> vector<20x128xf32>
    %c0_31 = arith.constant 0 : index
    %c0_32 = arith.constant 0 : index
    %84 = vector.load %arg8[%c0_31, %c0_32] : memref<20x128xf32, #tpu.memory_space<vmem>>, vector<20x128xf32>
    tpu.vector_store %arg8[%c0_31, %c0_32], %83 {strides = array<i32>} : memref<20x128xf32, #tpu.memory_space<vmem>>, vector<20x128xf32>,
    return
  }
  func.func @transform_0(%arg0: i32) -> (i32, i32) {
    %c0_i32 = arith.constant 0 : i32
    %c0_i32_0 = arith.constant 0 : i32
    %c0_i32_1 = arith.constant 0 : i32
    return %c0_i32, %c0_i32_0 : i32, i32
  }
  func.func @transform_1(%arg0: i32) -> (i32, i32) {
    %c0_i32 = arith.constant 0 : i32
    %c0_i32_0 = arith.constant 0 : i32
    %c0_i32_1 = arith.constant 0 : i32
    return %c0_i32, %c0_i32_0 : i32, i32
  }
  func.func @transform_2(%arg0: i32) -> (i32, i32) {
    %c0_i32 = arith.constant 0 : i32
    %c0_i32_0 = arith.constant 0 : i32
    %c0_i32_1 = arith.constant 0 : i32
    return %c0_i32, %c0_i32_0 : i32, i32
  }
  func.func @transform_3(%arg0: i32) -> (i32, i32) {
    %c0_i32 = arith.constant 0 : i32
    %c0_i32_0 = arith.constant 0 : i32
    %c0_i32_1 = arith.constant 0 : i32
    return %c0_i32, %c0_i32_0 : i32, i32
  }
  func.func @transform_4(%arg0: i32) -> (i32, i32) {
    %c0_i32 = arith.constant 0 : i32
    %c0_i32_0 = arith.constant 0 : i32
    %c0_i32_1 = arith.constant 0 : i32
    return %c0_i32, %c0_i32_0 : i32, i32
  }
  func.func @transform_5(%arg0: i32) -> (i32, i32) {
    %c0_i32 = arith.constant 0 : i32
    %c0_i32_0 = arith.constant 0 : i32
    %c0_i32_1 = arith.constant 0 : i32
    return %c0_i32, %c0_i32_0 : i32, i32
  }
  func.func @transform_6(%arg0: i32) -> (i32, i32) {
    %c0_i32 = arith.constant 0 : i32
    %c0_i32_0 = arith.constant 0 : i32
    %c0_i32_1 = arith.constant 0 : i32
    return %c0_i32, %c0_i32_0 : i32, i32
  }
  func.func @transform_7(%arg0: i32) -> (i32, i32) {
    %c0_i32 = arith.constant 0 : i32
    %c0_i32_0 = arith.constant 0 : i32
    %c0_i32_1 = arith.constant 0 : i32
    return %c0_i32, %c0_i32_0 : i32, i32
  }
}

</mosaic_0001>

<bundles_post_ra>
// kernel: _step_1_core.1
= control target key start
LH: loop header
LB: loop body
LE: loop exit
PB: predicated region body
PF: predicated region fallthrough
CT: control target
= control target key end

     0   :  { %vm35_vm0 = vcmask 261120   ;;  %vm221_vm5 = vcmask 257024   ;;  %s821_s2 = inlined_call_operand.vmem [shape: f32[32,32], index: 2, kind: input, shape index: {}]   ;;  %s822_s3 = inlined_call_operand.vmem [shape: f32[32,128], index: 3, kind: input, shape index: {}]   ;;  %s823_s1 = inlined_call_operand.vmem [shape: f32[20,32], index: 1, kind: input, shape index: {}]   ;;  %s824_s0 = inlined_call_operand.<no memory space> [shape: f32[1,1], index: 0, kind: input, shape index: {}]   ;;  %s825_s4 = inlined_call_operand.vmem [shape: f32[128,64], index: 4, kind: input, shape index: {}]   ;;  %s826_s6 = inlined_call_operand.vmem [shape: f32[5,128], index: 6, kind: input, shape index: {}]   ;;  %s827_s5 = inlined_call_operand.vmem [shape: f32[64,8], index: 5, kind: input, shape index: {}]   ;;  %s828_s7 = inlined_call_operand.vmem [shape: f32[20,128], index: 7, kind: output, shape index: {}]  }
   0x1   :  { %v34_v0 = vld [vmem:[%s821_s2 + $0x18] sm:$0xff]  ;;  %v33_v1 = vld [vmem:[%s821_s2 + $0x10] sm:$0xff]  ;;  %v32_v2 = vld [vmem:[%s821_s2 + $0x8] sm:$0xff]  ;;  %v72_v9 = vstv %s824_s0  ;;  %s524_s0 = smov 32  }
   0x2   :  { %57 = vmatpush.msra.mxu0 %v34_v0  ;;  %v93_v3 = vld [vmem:[%s822_s3 + $0x18] sm:$0xff]  ;;  %v92_v4 = vld [vmem:[%s822_s3 + $0x10] sm:$0xff]  ;;  %v31_v5 = vld [vmem:[%s821_s2] sm:$0xff]  ;;  %502 = vrcp.f32 %v72_v9  ;;  %vm78_vm1 = vweird.f32 %v72_v9  ;;  %v84_v16 = vand.u32 2147483648, %v72_v9  ;;  %v82_v18 = vand.u32 2147483647, %v72_v9 }
   0x3   :  { %116 = vmatpush.msra.mxu1 %v93_v3  ;;  %v28_v6 = vld [vmem:[%s823_s1] sm:$0xff]  ;;  %v29_v7 = vld [vmem:[%s823_s1 + $0x8] sm:$0xff]  ;;  %v30_v8 = vld [vmem:[%s823_s1 + $0x10] sm:$0xf] }
   0x4   :  { %58 = vmatpush.msra.mxu0 %v33_v1  ;;  %v91_v10 = vld [vmem:[%s822_s3 + $0x8] sm:$0xff]  ;;  %v90_v11 = vld [vmem:[%s822_s3] sm:$0xff]  ;;  %v85_v19 = vor.u32 1.1754944e-38, %v84_v16  ;;  %vm83_vm4 = vcmp.eq.f32.partialorder %v82_v18, 8.507059e+37  ;;  %v184_v28 = vld [vmem:[%s825_s4 + $0x78] sm:$0xff] }
   0x5   :  { %117 = vmatpush.msra.mxu1 %v92_v4  ;;  %v183_v29 = vld [vmem:[%s825_s4 + $0x70] sm:$0xff]  ;;  %483 = vmatpush.msra.mxu2 %v184_v28  ;;  %v182_v30 = vld [vmem:[%s825_s4 + $0x68] sm:$0xff]  ;;  %v181_v31 = vld [vmem:[%s825_s4 + $0x60] sm:$0xff] }
   0x6   :  { %59 = vmatpush.msra.mxu0 %v32_v2  ;;  %v180_v32 = vld [vmem:[%s825_s4 + $0x58] sm:$0xff]  ;;  %v179_v33 = vld [vmem:[%s825_s4 + $0x50] sm:$0xff]  ;;  %v178_v34 = vld [vmem:[%s825_s4 + $0x48] sm:$0xff] }
   0x7   :  { %118 = vmatpush.msra.mxu1 %v91_v10  ;;  %484 = vmatpush.msra.mxu2 %v183_v29  ;;  %v177_v35 = vld [vmem:[%s825_s4 + $0x40] sm:$0xff]  ;;  %v176_v36 = vld [vmem:[%s825_s4 + $0x38] sm:$0xff]  ;;  %v175_v37 = vld [vmem:[%s825_s4 + $0x30] sm:$0xff] }
   0x8   :  { %60 = vmatpush.msra.mxu0 %v31_v5  ;;  %v503_v12 = vpop.eup %502  ;;  %v174_v38 = vld [vmem:[%s825_s4 + $0x28] sm:$0xff]  ;;  %v173_v39 = vld [vmem:[%s825_s4 + $0x20] sm:$0xff]  ;;  %v172_v40 = vld [vmem:[%s825_s4 + $0x18] sm:$0xff] }
   0x9   :  { %474 = vmatmul.msk.f32.vlgmr.msra.gmra.mxu0 %vm35_vm0, %v28_v6  ;;  %119 = vmatpush.msra.mxu1 %v90_v11  ;;  %v74_v13 = vmul.f32 %v503_v12, %v72_v9  ;;  %vm79_vm2 = vweird.f32 %v503_v12  ;;  %v171_v41 = vld [vmem:[%s825_s4 + $0x10] sm:$0xff]  ;;  %v170_v42 = vld [vmem:[%s825_s4 + $0x8] sm:$0xff]  ;;  %v169_v43 = vld [vmem:[%s825_s4] sm:$0xff]  ;;  %s525_s4 = smov 96  }
   0xa   :  { %vm80_vm3 = vmor %vm78_vm1, %vm79_vm2  ;;  %186 = vmatpush.msrb.mxu0 %v184_v28  ;;  %485 = vmatpush.msra.mxu2 %v182_v30  ;;  %v675_v44 = vld [vmem:[%s826_s6] sm:$0x1f] }
   0xb   :  { %v75_v14 = vsub.f32 1.0, %v74_v13  ;;  %v94_v45 = vperm.slane %v675_v44, 0 }
   0xc   :  { %187 = vmatpush.msrb.mxu0 %v183_v29  ;;  %486 = vmatpush.msra.mxu2 %v181_v31 }
   0xd   :  { %v76_v15 = vmul.f32 %v503_v12, %v75_v14 }
   0xe   :  { %188 = vmatpush.msrb.mxu0 %v182_v30  ;;  %487 = vmatpush.msra.mxu2 %v180_v32 }
   0xf   :  { %v77_v17 = vadd.f32 %v503_v12, %v76_v15  ;;  %v185_v15 = vperm.slane %v675_v44, 1 }
  0x10   :  { %189 = vmatpush.msrb.mxu0 %v181_v31  ;;  %488 = vmatpush.msra.mxu2 %v179_v33 }
  0x11   :  { %475 = vmatmul.msk.f32.gmra.mxu0 %vm35_vm0, %v29_v7  ;;  %v81_v20 = vsel %vm80_vm3, %v503_v12, %v77_v17 }
  0x12   :  { %v86_v21 = vsel %vm83_vm4, %v85_v19, %v81_v20  ;;  %190 = vmatpush.msrb.mxu0 %v180_v32  ;;  %489 = vmatpush.msra.mxu2 %v178_v34 }
  0x14   :  { %191 = vmatpush.msrb.mxu0 %v179_v33  ;;  %490 = vmatpush.msra.mxu2 %v177_v35 }
  0x16   :  { %192 = vmatpush.msrb.mxu0 %v178_v34  ;;  %491 = vmatpush.msra.mxu2 %v176_v36 }
  0x18   :  { %193 = vmatpush.msrb.mxu0 %v177_v35  ;;  %492 = vmatpush.msra.mxu2 %v175_v37 }
  0x19   :  { %476 = vmatmul.msk.f32.gmra.mxu0 %vm35_vm0, %v30_v8 }
  0x1a   :  { %194 = vmatpush.msrb.mxu0 %v176_v36  ;;  %493 = vmatpush.msra.mxu2 %v174_v38 }
  0x1c   :  { %195 = vmatpush.msrb.mxu0 %v175_v37  ;;  %494 = vmatpush.msra.mxu2 %v173_v39 }
  0x1e   :  { %196 = vmatpush.msrb.mxu0 %v174_v38  ;;  %495 = vmatpush.msra.mxu2 %v172_v40 }
  0x20   :  { %197 = vmatpush.msrb.mxu0 %v173_v39  ;;  %496 = vmatpush.msra.mxu2 %v171_v41 }
  0x22   :  { %198 = vmatpush.msrb.mxu0 %v172_v40  ;;  %497 = vmatpush.msra.mxu2 %v170_v42 }
  0x24   :  { %199 = vmatpush.msrb.mxu0 %v171_v41  ;;  %498 = vmatpush.msra.mxu2 %v169_v43 }
  0x26   :  { %200 = vmatpush.msrb.mxu0 %v170_v42 }
  0x28   :  { %201 = vmatpush.msrb.mxu0 %v169_v43  ;;  %v526_v43 = vmov 32.0  }
  0x86   :  { %v62_v22 = vpop.f32.mrf.mxu0 }
  0x87   :  { %v606_v23 = vmul.f32 %v86_v21, %v62_v22 }
  0x89   :  { %157 = vrot.lane.b32.xlu0 %v606_v23, %s524_s0  ;;  %477 = vmatmul.msk.f32.vlgmr.msra.gmra.mxu1 %vm35_vm0, %v606_v23 }
  0x8e   :  { %v65_v24 = vpop.f32.mrf.mxu0 }
  0x8f   :  { %v612_v25 = vmul.f32 %v86_v21, %v65_v24 }
  0x91   :  { %159 = vrot.lane.b32.xlu0 %v612_v25, %s524_s0  ;;  %478 = vmatmul.msk.f32.gmra.mxu1 %vm35_vm0, %v612_v25 }
  0x96   :  { %v68_v26 = vpop.f32.mrf.mxu0 }
  0x97   :  { %v618_v27 = vmul.f32 %v86_v21, %v68_v26 }
  0x99   :  { %161 = vrot.lane.b32.xlu1 %v618_v27, %s524_s0  ;;  %479 = vmatmul.msk.f32.gmra.mxu1 %vm35_vm0, %v618_v27 }
  0xfb   :  { %v158_v16 = vpop.permute.xlu0 %157 }
  0xfc   :  { %v166_v19 = vsel %vm35_vm0, %v606_v23, %v158_v16 }
 0x103   :  { %v160_v21 = vpop.permute.xlu0 %159 }
 0x104   :  { %v167_v26 = vsel %vm35_vm0, %v612_v25, %v160_v21 }
 0x106   :  { %v121_v46 = vpop.f32.mrf.mxu1 }
 0x107   :  { %v122_v47 = vadd.f32 %v121_v46, %v94_v45 }
 0x109   :  { %v133_v48 = vmul.f32 0.044715, %v122_v47  ;;  %v130_v0 = vmul.f32 0.5, %v122_v47 }
 0x10b   :  { %v136_v49 = vmul.f32 %v133_v48, %v122_v47  ;;  %v162_v29 = vpop.permute.xlu1 %161 }
 0x10c   :  { %v168_v32 = vsel %vm35_vm0, %v618_v27, %v162_v29 }
 0x10d   :  { %v139_v50 = vmul.f32 %v136_v49, %v122_v47 }
 0x10e   :  { %v124_v51 = vpop.f32.mrf.mxu1 }
 0x10f   :  { %v125_v52 = vadd.f32 %v124_v51, %v94_v45  ;;  %v142_v53 = vadd.f32 %v139_v50, %v122_v47 }
 0x111   :  { %v145_v54 = vmul.f32 0.7978846, %v142_v53  ;;  %v134_v55 = vmul.f32 0.044715, %v125_v52  ;;  %v131_v6 = vmul.f32 0.5, %v125_v52 }
 0x113   :  { %504 = vtanh.f32 %v145_v54  ;;  %v137_v56 = vmul.f32 %v134_v55, %v125_v52 }
 0x115   :  { %v140_v57 = vmul.f32 %v137_v56, %v125_v52 }
 0x116   :  { %v127_v58 = vpop.f32.mrf.mxu1 }
 0x117   :  { %v128_v59 = vadd.f32 %v127_v58, %v94_v45  ;;  %v143_v60 = vadd.f32 %v140_v57, %v125_v52 }
 0x119   :  { %v505_v61 = vpop.eup %504  ;;  %v146_v62 = vmul.f32 0.7978846, %v143_v60  ;;  %v135_v63 = vmul.f32 0.044715, %v128_v59  ;;  %v132_v11 = vmul.f32 0.5, %v128_v59 }
 0x11a   :  { %v151_v1 = vadd.f32 1.0, %v505_v61 }
 0x11b   :  { %506 = vtanh.f32 %v146_v62  ;;  %v138_v2 = vmul.f32 %v135_v63, %v128_v59 }
 0x11c   :  { %v154_v3 = vmul.f32 %v151_v1, %v130_v0 }
 0x11d   :  { %v141_v4 = vmul.f32 %v138_v2, %v128_v59 }
 0x11e   :  { %202 = vmatmul.f32.vlgmr.msrb.gmra.mxu0 %v154_v3 }
 0x11f   :  { %v144_v5 = vadd.f32 %v141_v4, %v128_v59 }
 0x121   :  { %v507_v7 = vpop.eup %506  ;;  %v147_v8 = vmul.f32 0.7978846, %v144_v5 }
 0x122   :  { %v152_v9 = vadd.f32 1.0, %v507_v7 }
 0x123   :  { %508 = vtanh.f32 %v147_v8 }
 0x124   :  { %v155_v10 = vmul.f32 %v152_v9, %v131_v6  ;;  %510 = vrcp.f32 %v526_v43  ;;  %v396_v43 = vld [vmem:[%s827_s5 + $0x30] sm:$0xff] }
 0x126   :  { %205 = vmatmul.f32.vlgmr.msra.gmra.mxu2 %v155_v10 }
 0x129   :  { %v509_v12 = vpop.eup %508 }
 0x12a   :  { %v153_v13 = vadd.f32 1.0, %v509_v12  ;;  %v511_v45 = vpop.eup %510 }
 0x12b   :  { %v226_v46 = vmul.f32 32.0, %v511_v45  ;;  %vm230_vm6 = vweird.f32 %v511_v45 }
 0x12c   :  { %v156_v14 = vmul.f32 %v153_v13, %v132_v11 }
 0x12d   :  { %v227_v47 = vsub.f32 1.0, %v226_v46 }
 0x12e   :  { %208 = vmatmul.f32.gmra.mxu2 %v156_v14 }
 0x12f   :  { %v228_v48 = vmul.f32 %v511_v45, %v227_v47 }
 0x131   :  { %v229_v49 = vadd.f32 %v511_v45, %v228_v48  ;;  %v395_v48 = vld [vmem:[%s827_s5 + $0x28] sm:$0xff] }
 0x133   :  { %v694_v50 = vsel %vm230_vm6, %v511_v45, %v229_v49 }
 0x19b   :  { %v203_v17 = vpop.f32.mrf.mxu0 }
 0x19c   :  { %v204_v18 = vadd.f32 %v203_v17, %v185_v15 }
 0x19e   :  { %v212_v20 = vadd.f32 %v204_v18, %v166_v19 }
 0x1a0   :  { %292 = vrot.lane.b32.xlu1 %v212_v20, %s525_s4  ;;  %v215_v34 = vsel %vm35_vm0, %v212_v20, 0.0 }
 0x1a9   :  { %v206_v22 = vpop.f32.mrf.mxu2 }
 0x1aa   :  { %v207_v24 = vadd.f32 %v206_v22, %v185_v15 }
 0x1ac   :  { %v213_v28 = vadd.f32 %v207_v24, %v167_v26 }
 0x1ae   :  { %294 = vrot.lane.b32.xlu2 %v213_v28, %s525_s4  ;;  %v218_v38 = vsel %vm35_vm0, %v213_v28, 0.0 }
 0x1b1   :  { %v209_v30 = vpop.f32.mrf.mxu2 }
 0x1b2   :  { %v210_v31 = vadd.f32 %v209_v30, %v185_v15 }
 0x1b4   :  { %v214_v33 = vadd.f32 %v210_v31, %v168_v32 }
 0x1b6   :  { %296 = vrot.lane.b32.xlu2 %v214_v33, %s525_s4  ;;  %v222_v42 = vsel %vm221_vm5, %v214_v33, 0.0 }
 0x1df   :  { %216 = vadd.xlane.f32.xlu2 %v215_v34 }
 0x208   :  { %v295_v35 = vpop.permute.xlu2 %294 }
 0x209   :  { %v304_v36 = vsel %vm35_vm0, %v295_v35, 0.0 }
 0x20a   :  { %305 = vadd.xlane.f32.xlu1 %v304_v36 }
 0x210   :  { %v297_v37 = vpop.permute.xlu2 %296 }
 0x211   :  { %v307_v39 = vsel %vm221_vm5, %v297_v37, 0.0 }
 0x212   :  { %219 = vadd.xlane.f32.xlu1 %v218_v38  ;;  %v293_v40 = vpop.permute.xlu1 %292  ;;  %308 = vadd.xlane.f32.xlu2 %v307_v39 }
 0x213   :  { %v301_v41 = vsel %vm35_vm0, %v293_v40, 0.0 }
 0x214   :  { %302 = vadd.xlane.f32.xlu0 %v301_v41  ;;  %v397_v41 = vld [vmem:[%s827_s5 + $0x38] sm:$0xff] }
 0x215   :  { %417 = vmatpush.msra.mxu3 %v397_v41 }
 0x217   :  { %418 = vmatpush.msra.mxu3 %v396_v43 }
 0x219   :  { %419 = vmatpush.msra.mxu3 %v395_v48 }
 0x21a   :  { %223 = vadd.xlane.f32.xlu1 %v222_v42 }
 0x252   :  { %v217_v51 = vpop.xlane.xlu2 %216 }
 0x253   :  { %v232_v2 = vmul.f32 %v694_v50, %v217_v51 }
 0x255   :  { %v718_v4 = vsub.f32 %v212_v20, %v232_v2 }
 0x257   :  { %v238_v6 = vmul.f32 %v718_v4, %v718_v4 }
 0x259   :  { %v241_v8 = vsel %vm35_vm0, %v238_v6, 0.0 }
 0x27d   :  { %v306_v52 = vpop.xlane.xlu1 %305 }
 0x27e   :  { %v311_v53 = vmul.f32 %v306_v52, %v694_v50  ;;  %v748_v52 = vperm.slane %v675_v44, 2 }
 0x280   :  { %v697_v54 = vsub.f32 %v213_v28, %v311_v53  ;;  %v394_v53 = vld [vmem:[%s827_s5 + $0x20] sm:$0xff] }
 0x281   :  { %420 = vmatpush.msra.mxu3 %v394_v53  ;;  %v398_v53 = vperm.slane %v675_v44, 4 }
 0x282   :  { %v317_v55 = vmul.f32 %v697_v54, %v697_v54 }
 0x284   :  { %324 = vrot.lane.b32.xlu2 %v317_v55, %s525_s4 }
 0x285   :  { %v309_v56 = vpop.xlane.xlu2 %308  ;;  %v220_v0 = vpop.xlane.xlu1 %219 }
 0x286   :  { %v312_v57 = vmul.f32 %v309_v56, %v694_v50  ;;  %v233_v1 = vmul.f32 %v694_v50, %v220_v0 }
 0x287   :  { %v303_v58 = vpop.xlane.xlu0 %302 }
 0x288   :  { %v703_v59 = vsub.f32 %v214_v33, %v312_v57  ;;  %v310_v60 = vmul.f32 %v303_v58, %v694_v50  ;;  %v716_v3 = vsub.f32 %v213_v28, %v233_v1  ;;  %v756_v57 = vperm.slane %v675_v44, 3  ;;  %v393_v58 = vld [vmem:[%s827_s5 + $0x18] sm:$0xff]  ;;  %v391_v1 = vld [vmem:[%s827_s5 + $0x8] sm:$0xff] }
 0x289   :  { %421 = vmatpush.msra.mxu3 %v393_v58 }
 0x28a   :  { %v706_v61 = vsub.f32 %v212_v20, %v310_v60  ;;  %v318_v62 = vmul.f32 %v703_v59, %v703_v59  ;;  %v239_v5 = vmul.f32 %v716_v3, %v716_v3 }
 0x28c   :  { %326 = vrot.lane.b32.xlu1 %v318_v62, %s525_s4  ;;  %v316_v63 = vmul.f32 %v706_v61, %v706_v61  ;;  %v244_v7 = vsel %vm35_vm0, %v239_v5, 0.0  ;;  %v390_v5 = vld [vmem:[%s827_s5] sm:$0xff] }
 0x28d   :  { %v224_v9 = vpop.xlane.xlu1 %223 }
 0x28e   :  { %322 = vrot.lane.b32.xlu0 %v316_v63, %s525_s4  ;;  %v234_v10 = vmul.f32 %v694_v50, %v224_v9 }
 0x290   :  { %v727_v12 = vsub.f32 %v214_v33, %v234_v10 }
 0x292   :  { %v240_v14 = vmul.f32 %v727_v12, %v727_v12 }
 0x294   :  { %v247_v15 = vsel %vm221_vm5, %v240_v14, 0.0 }
 0x2b6   :  { %245 = vadd.xlane.f32.xlu1 %v244_v7 }
 0x2b8   :  { %242 = vadd.xlane.f32.xlu0 %v241_v8 }
 0x2de   :  { %v325_v11 = vpop.permute.xlu2 %324 }
 0x2df   :  { %v334_v13 = vsel %vm35_vm0, %v325_v11, 0.0 }
 0x2e0   :  { %335 = vadd.xlane.f32.xlu0 %v334_v13 }
 0x2e8   :  { %248 = vadd.xlane.f32.xlu0 %v247_v15 }
 0x2fe   :  { %v327_v18 = vpop.permute.xlu1 %326 }
 0x2ff   :  { %v337_v19 = vsel %vm221_vm5, %v327_v18, 0.0 }
 0x300   :  { %v323_v16 = vpop.permute.xlu0 %322 }
 0x301   :  { %v331_v17 = vsel %vm35_vm0, %v323_v16, 0.0 }
 0x302   :  { %332 = vadd.xlane.f32.xlu2 %v331_v17 }
 0x30a   :  { %338 = vadd.xlane.f32.xlu2 %v337_v19 }
 0x329   :  { %v246_v20 = vpop.xlane.xlu1 %245 }
 0x32a   :  { %v251_v21 = vmul.f32 %v246_v20, %v694_v50 }
 0x32b   :  { %v243_v24 = vpop.xlane.xlu0 %242 }
 0x32c   :  { %v254_v22 = vadd.f32 1e-12, %v251_v21  ;;  %v250_v39 = vmul.f32 %v243_v24, %v694_v50 }
 0x32e   :  { %512 = vrsqrt.f32 %v254_v22  ;;  %vm272_vm8 = vweird.f32 %v254_v22  ;;  %v253_v46 = vadd.f32 1e-12, %v250_v39 }
 0x330   :  { %vm262_vm14 = vweird.f32 %v253_v46 }
 0x334   :  { %v513_v26 = vpop.eup %512 }
 0x335   :  { %v267_v28 = vmul.f32 %v513_v26, %v254_v22  ;;  %vm273_vm7 = vweird.f32 %v513_v26 }
 0x336   :  { %vm274_vm10 = vmor %vm272_vm8, %vm273_vm7  ;;  %vm399_vm8 = vcmask 523264  }
 0x337   :  { %v268_v32 = vmul.f32 %v513_v26, %v267_v28 }
 0x339   :  { %v269_v33 = vmul.f32 0.5, %v268_v32 }
 0x33b   :  { %v270_v35 = vsub.f32 1.5, %v269_v33 }
 0x33d   :  { %v271_v38 = vmul.f32 %v513_v26, %v270_v35 }
 0x33f   :  { %v275_v45 = vsel %vm274_vm10, %v513_v26, %v271_v38 }
 0x340   :  { %v287_v55 = vmul.f32 %v275_v45, %v716_v3 }
 0x353   :  { %v336_v29 = vpop.xlane.xlu0 %335 }
 0x354   :  { %v341_v30 = vmul.f32 %v336_v29, %v694_v50 }
 0x356   :  { %v344_v31 = vadd.f32 1e-12, %v341_v30 }
 0x358   :  { %514 = vrsqrt.f32 %v344_v31  ;;  %vm362_vm11 = vweird.f32 %v344_v31 }
 0x359   :  { %516 = vrsqrt.f32 %v253_v46 }
 0x35b   :  { %v249_v51 = vpop.xlane.xlu0 %248 }
 0x35c   :  { %v252_v60 = vmul.f32 %v249_v51, %v694_v50 }
 0x35e   :  { %v515_v34 = vpop.eup %514  ;;  %v255_v2 = vadd.f32 1e-12, %v252_v60 }
 0x35f   :  { %v357_v36 = vmul.f32 %v515_v34, %v344_v31  ;;  %vm363_vm9 = vweird.f32 %v515_v34  ;;  %v517_v3 = vpop.eup %516 }
 0x360   :  { %vm364_vm12 = vmor %vm362_vm11, %vm363_vm9  ;;  %v257_v6 = vmul.f32 %v517_v3, %v253_v46  ;;  %518 = vrsqrt.f32 %v255_v2  ;;  %vm263_vm13 = vweird.f32 %v517_v3  ;;  %vm282_vm5 = vweird.f32 %v255_v2 }
 0x361   :  { %v358_v37 = vmul.f32 %v515_v34, %v357_v36  ;;  %vm264_vm15 = vmor %vm262_vm14, %vm263_vm13  ;;  %vm459_vm11 = vcmask 785408  }
 0x362   :  { %v258_v9 = vmul.f32 %v517_v3, %v257_v6 }
 0x363   :  { %v359_v40 = vmul.f32 0.5, %v358_v37 }
 0x364   :  { %v259_v13 = vmul.f32 0.5, %v258_v9 }
 0x365   :  { %v360_v42 = vsub.f32 1.5, %v359_v40 }
 0x366   :  { %v519_v11 = vpop.eup %518  ;;  %v260_v18 = vsub.f32 1.5, %v259_v13 }
 0x367   :  { %v361_v47 = vmul.f32 %v515_v34, %v360_v42  ;;  %v277_v14 = vmul.f32 %v519_v11, %v255_v2  ;;  %vm283_vm4 = vweird.f32 %v519_v11 }
 0x368   :  { %v261_v24 = vmul.f32 %v517_v3, %v260_v18  ;;  %vm284_vm7 = vmor %vm282_vm5, %vm283_vm4 }
 0x369   :  { %v365_v49 = vsel %vm364_vm12, %v515_v34, %v361_v47  ;;  %v278_v20 = vmul.f32 %v519_v11, %v277_v14  ;;  %vm463_vm12 = vcmask 850944  }
 0x36a   :  { %v377_v56 = vmul.f32 %v365_v49, %v697_v54  ;;  %v392_v54 = vld [vmem:[%s827_s5 + $0x10] sm:$0xff]  ;;  %v265_v31 = vsel %vm264_vm15, %v517_v3, %v261_v24 }
 0x36b   :  { %422 = vmatpush.msra.mxu3 %v392_v54  ;;  %v279_v26 = vmul.f32 0.5, %v278_v20  ;;  %v286_v36 = vmul.f32 %v265_v31, %v718_v4 }
 0x36c   :  { %v380_v62 = vsel %vm35_vm0, %v287_v55, %v377_v56 }
 0x36d   :  { %v384_v63 = vmul.f32 %v748_v52, %v380_v62  ;;  %423 = vmatpush.msra.mxu3 %v391_v1  ;;  %v280_v32 = vsub.f32 1.5, %v279_v26 }
 0x36f   :  { %v768_v0 = vadd.f32 %v756_v57, %v384_v63  ;;  %424 = vmatpush.msra.mxu3 %v390_v5  ;;  %v281_v38 = vmul.f32 %v519_v11, %v280_v32 }
 0x371   :  { %437 = vrot.lane.b32.xlu2 %v768_v0, %s524_s0  ;;  %v285_v43 = vsel %vm284_vm7, %v519_v11, %v281_v38 }
 0x375   :  { %v333_v7 = vpop.xlane.xlu2 %332 }
 0x376   :  { %v340_v8 = vmul.f32 %v333_v7, %v694_v50 }
 0x378   :  { %v343_v10 = vadd.f32 1e-12, %v340_v8 }
 0x37a   :  { %520 = vrsqrt.f32 %v343_v10  ;;  %vm352_vm2 = vweird.f32 %v343_v10 }
 0x37d   :  { %v339_v15 = vpop.xlane.xlu2 %338 }
 0x37e   :  { %v342_v16 = vmul.f32 %v339_v15, %v694_v50 }
 0x380   :  { %v521_v17 = vpop.eup %520  ;;  %v345_v19 = vadd.f32 1e-12, %v342_v16 }
 0x381   :  { %v347_v21 = vmul.f32 %v521_v17, %v343_v10  ;;  %vm353_vm1 = vweird.f32 %v521_v17 }
 0x382   :  { %522 = vrsqrt.f32 %v345_v19  ;;  %vm354_vm3 = vmor %vm352_vm2, %vm353_vm1  ;;  %vm372_vm9 = vweird.f32 %v345_v19 }
 0x383   :  { %v348_v22 = vmul.f32 %v521_v17, %v347_v21 }
 0x385   :  { %v349_v28 = vmul.f32 0.5, %v348_v22 }
 0x387   :  { %v350_v29 = vsub.f32 1.5, %v349_v28 }
 0x388   :  { %v523_v30 = vpop.eup %522 }
 0x389   :  { %v351_v33 = vmul.f32 %v521_v17, %v350_v29  ;;  %v367_v50 = vmul.f32 %v523_v30, %v345_v19  ;;  %vm373_vm6 = vweird.f32 %v523_v30 }
 0x38a   :  { %vm374_vm10 = vmor %vm372_vm9, %vm373_vm6 }
 0x38b   :  { %v355_v34 = vsel %vm354_vm3, %v521_v17, %v351_v33  ;;  %v368_v35 = vmul.f32 %v523_v30, %v367_v50 }
 0x38c   :  { %v376_v37 = vmul.f32 %v355_v34, %v706_v61  ;;  %v288_v61 = vmul.f32 %v285_v43, %v727_v12 }
 0x38d   :  { %v369_v39 = vmul.f32 0.5, %v368_v35 }
 0x38e   :  { %v379_v40 = vsel %vm35_vm0, %v286_v36, %v376_v37 }
 0x38f   :  { %v370_v41 = vsub.f32 1.5, %v369_v39  ;;  %v383_v42 = vmul.f32 %v748_v52, %v379_v40 }
 0x391   :  { %v371_v45 = vmul.f32 %v523_v30, %v370_v41  ;;  %v387_v46 = vadd.f32 %v756_v57, %v383_v42 }
 0x393   :  { %v375_v4 = vsel %vm374_vm10, %v523_v30, %v371_v45  ;;  %435 = vrot.lane.b32.xlu0 %v387_v46, %s524_s0  ;;  %480 = vmatmul.msk.f32.vlgmr.msra.gmra.mxu3 %vm399_vm8, %v387_v46 }
 0x394   :  { %v378_v47 = vmul.f32 %v375_v4, %v703_v59 }
 0x396   :  { %v381_v48 = vsel %vm35_vm0, %v288_v61, %v378_v47 }
 0x397   :  { %v385_v49 = vmul.f32 %v748_v52, %v381_v48 }
 0x399   :  { %v389_v51 = vadd.f32 %v756_v57, %v385_v49 }
 0x39b   :  { %481 = vmatmul.msk.f32.gmra.mxu3 %vm399_vm8, %v768_v0  ;;  %439 = vrot.lane.b32.xlu1 %v389_v51, %s524_s0 }
 0x3a3   :  { %482 = vmatmul.msk.f32.gmra.mxu3 %vm399_vm8, %v389_v51 }
 0x3cb   :  { %v438_v57 = vpop.permute.xlu2 %437 }
 0x3cc   :  { %v457_v60 = vsel %vm35_vm0, %v612_v25, %v438_v57 }
 0x405   :  { %v436_v54 = vpop.permute.xlu0 %435 }
 0x406   :  { %v456_v0 = vsel %vm35_vm0, %v606_v23, %v436_v54 }
 0x40d   :  { %v440_v25 = vpop.permute.xlu1 %439 }
 0x40e   :  { %v458_v5 = vsel %vm35_vm0, %v618_v27, %v440_v25 }
 0x416   :  { %v426_v55 = vpop.f32.mrf.mxu3 }
 0x417   :  { %v427_v56 = vadd.f32 %v426_v55, %v398_v53 }
 0x419   :  { %447 = vrot.lane.b32.xlu0 %v427_v56, %s525_s4 }
 0x41e   :  { %v429_v59 = vpop.f32.mrf.mxu3 }
 0x41f   :  { %v430_v12 = vadd.f32 %v429_v59, %v398_v53 }
 0x421   :  { %449 = vrot.lane.b32.xlu2 %v430_v12, %s525_s4 }
 0x426   :  { %v432_v52 = vpop.f32.mrf.mxu3 }
 0x427   :  { %v433_v58 = vadd.f32 %v432_v52, %v398_v53 }
 0x429   :  { %451 = vrot.lane.b32.xlu0 %v433_v58, %s525_s4 }
 0x47b   :  { %v450_v62 = vpop.permute.xlu2 %449 }
 0x47c   :  { %v461_v44 = vsel %vm459_vm11, %v457_v60, %v450_v62 }
 0x47d   :  { %v465_v63 = vsel %vm463_vm12, %v461_v44, 0.0 }
 0x47e   :  { %468 = vst [vmem:[%s828_s7 + $0x8] sm:$0xff] %v465_v63 }
 0x48b   :  { %v448_v1 = vpop.permute.xlu0 %447 }
 0x48c   :  { %v460_v2 = vsel %vm459_vm11, %v456_v0, %v448_v1 }
 0x48d   :  { %v464_v3 = vsel %vm463_vm12, %v460_v2, 0.0 }
 0x48e   :  { %467 = vst [vmem:[%s828_s7] sm:$0xff] %v464_v3 }
 0x49b   :  { %v452_v6 = vpop.permute.xlu0 %451 }
 0x49c   :  { %v462_v7 = vsel %vm459_vm11, %v458_v5, %v452_v6 }
 0x49d   :  { %v466_v8 = vsel %vm463_vm12, %v462_v7, 0.0 }
 0x49e   :  { %469 = vst [vmem:[%s828_s7 + $0x10] sm:$0xf] %v466_v8 }

</bundles_post_ra>
